<compile_context>
chip_gen: v7x
topology: tpu7x:2x2x1
jax: 0.10.0
libtpu: 0.0.40
codegen_flags: <defaults>
</compile_context>

<pallas_src>
import functools

import jax
import jax.numpy as jnp
from jax import lax
from jax.experimental import pallas as pl
from jax.experimental.pallas import tpu as pltpu


# -----------------------------------------------------------------------------
# Fused Pallas kernel (per batch block): 3 conv blocks + adv linear
# -----------------------------------------------------------------------------
def _disc_fused_kernel(x_ref, w1_ref, w2_ref, w3_ref, prm_ref, advw_ref, sel_ref,
                       h1_ref, h2_ref, h3_ref, v_ref, *, bb):
    # Static sizes from the (squeezed) output refs.  h1/h2 carry one leading
    # zero pad row; h3 does not.
    M1 = h1_ref.shape[0] - 1          # bb * T1
    M2 = h2_ref.shape[0] - 1          # bb * T2
    M3 = h3_ref.shape[0]              # bb * T3
    H = h1_ref.shape[1]
    T1, T2, T3 = M1 // bb, M2 // bb, M3 // bb

    def conv_block(src_ref, w_ref, bias, m_out, t_out, scale=None, shift=None):
        # Output row r reads src rows 2r + k (row 0 of src is the zero pad),
        # i.e. the stride-2, k=3, pad=1 Conv1d window in channels-last layout.
        p0 = src_ref[pl.ds(0, m_out, stride=2), :]     # k = 0 (left tap)
        p1 = src_ref[pl.ds(1, m_out, stride=2), :]     # k = 1 (center tap)
        p2 = src_ref[pl.ds(2, m_out, stride=2), :]     # k = 2 (right tap)
        if bb > 1:
            # Zero the left tap at every per-batch t == 0 row (conv zero pad);
            # those rows would otherwise read the previous batch element.
            r = lax.broadcasted_iota(jnp.int32, p0.shape, 0)
            p0 = jnp.where((r % t_out) != 0, p0, 0.0)
        y = (jnp.dot(p0, w_ref[0], preferred_element_type=jnp.float32)
             + jnp.dot(p1, w_ref[1], preferred_element_type=jnp.float32)
             + jnp.dot(p2, w_ref[2], preferred_element_type=jnp.float32)
             + bias)
        y = jnp.where(y >= 0.0, y, 0.2 * y)            # LeakyReLU(0.2)
        if scale is not None:                          # eval-mode BN affine
            y = y * scale + shift
        return y

    zrow = jnp.zeros((1, H), jnp.float32)

    # ---- block 1: Conv1d(C_in -> H) + bias + LeakyReLU (first => no BN) ----
    y1 = conv_block(x_ref, w1_ref, prm_ref[0:1, :], M1, T1)
    h1_ref[0:1, :] = zrow                              # pad row (staging reuse)
    h1_ref[pl.ds(1, M1), :] = y1

    # ---- block 2: Conv1d(H -> H) + bias + LeakyReLU + BN affine ----
    y2 = conv_block(h1_ref, w2_ref, prm_ref[1:2, :], M2, T2,
                    prm_ref[2:3, :], prm_ref[3:4, :])
    h2_ref[0:1, :] = zrow
    h2_ref[pl.ds(1, M2), :] = y2

    # ---- block 3: Conv1d(H -> H) + bias + LeakyReLU + BN affine ----
    y3 = conv_block(h2_ref, w3_ref, prm_ref[4:5, :], M3, T3,
                    prm_ref[5:6, :], prm_ref[6:7, :])
    h3_ref[...] = y3

    # ---- adv Linear: validity[b] = <flatten_(c,t)(y3[b]), adv_w> + adv_b ----
    prod = y3 * advw_ref[...]                                    # [bb*T3, H]
    per_b = jnp.dot(sel_ref[...], prod,
                    preferred_element_type=jnp.float32)          # [bb, H]
    v_ref[...] = jnp.sum(per_b, axis=1, keepdims=True) + prm_ref[7:8, 0:1]


# -----------------------------------------------------------------------------
# One-time parameter packing (hoisted out of the hot forward path)
# -----------------------------------------------------------------------------
def pack_params(p, batch_block):
    """Repack PyTorch-shaped params for the kernel. Run once, outside jit."""
    f32 = jnp.float32
    H = p["b1"].shape[0]
    assert p["w1"].shape[2] == 3

    def conv_pack(w):                       # [C_out, C_in, K] -> [K, C_in, C_out]
        return jnp.transpose(w, (2, 1, 0)).astype(f32)

    # Per-channel params in one [8, H] slab:
    #   0: b1 | 1: b2 | 2: s2 | 3: t2 | 4: b3 | 5: s3 | 6: t3 | 7: adv_b
    prm = jnp.stack([p["b1"], p["b2"], p["s2"], p["t2"],
                     p["b3"], p["s3"], p["t3"],
                     jnp.full((H,), p["adv_b"][0], f32)], axis=0).astype(f32)

    # torch flattens x3 as (c, t); reorder adv weights to channels-last (t, c)
    # and pre-tile over the batch block so no tiling happens per forward call.
    T3 = p["adv_w"].shape[1] // H
    advw_tc = p["adv_w"].reshape(H, T3).T.astype(f32)            # [T3, H]
    advw_tiled = jnp.tile(advw_tc, (batch_block, 1))             # [BB*T3, H]

    # Batch-block selection matrix for the per-batch time reduction.
    sel = jnp.kron(jnp.eye(batch_block, dtype=f32),
                   jnp.ones((1, T3), f32))                       # [BB, BB*T3]

    return {"w1": conv_pack(p["w1"]), "w2": conv_pack(p["w2"]),
            "w3": conv_pack(p["w3"]), "prm": prm,
            "advw": advw_tiled, "sel": sel}


# -----------------------------------------------------------------------------
# Forward wrapper: minimal layout glue + single pallas_call
# -----------------------------------------------------------------------------
def discriminator_forward(x, packed):
    """x: [B, C_in, T] (NCT) -> (validity [B, 1], h = list of NCT hiddens)."""
    B, C_in, T = x.shape
    assert T >= 8 and T % 8 == 0
    H = packed["prm"].shape[1]
    bb = packed["sel"].shape[0]            # batch elements per grid step
    assert B % bb == 0
    nb = B // bb                           # grid steps ("parallel": 2 on v7x)
    T1, T2, T3 = T // 2, T // 4, T // 8

    # Channels-last, batch folded onto the sublane axis, one leading zero row
    # per batch block (the conv left pad for the first batch element).
    xcl = jnp.transpose(x, (0, 2, 1)).astype(jnp.float32).reshape(nb, bb * T, C_in)
    x_stage = jnp.pad(xcl, ((0, 0), (1, 0), (0, 0)))             # [nb, 1+bb*T, C_in]

    kernel = functools.partial(_disc_fused_kernel, bb=bb)

    h1p, h2p, h3f, v = pl.pallas_call(
        kernel,
        out_shape=(
            jax.ShapeDtypeStruct((nb, 1 + bb * T1, H), jnp.float32),
            jax.ShapeDtypeStruct((nb, 1 + bb * T2, H), jnp.float32),
            jax.ShapeDtypeStruct((nb, bb * T3, H), jnp.float32),
            jax.ShapeDtypeStruct((nb, bb, 1), jnp.float32),
        ),
        grid=(nb,),
        in_specs=[
            pl.BlockSpec((None, 1 + bb * T, C_in), lambda i: (i, 0, 0)),
            pl.BlockSpec((3, C_in, H), lambda i: (0, 0, 0)),
            pl.BlockSpec((3, H, H), lambda i: (0, 0, 0)),
            pl.BlockSpec((3, H, H), lambda i: (0, 0, 0)),
            pl.BlockSpec((8, H), lambda i: (0, 0)),
            pl.BlockSpec((bb * T3, H), lambda i: (0, 0)),
            pl.BlockSpec((bb, bb * T3), lambda i: (0, 0)),
        ],
        out_specs=(
            pl.BlockSpec((None, 1 + bb * T1, H), lambda i: (i, 0, 0)),
            pl.BlockSpec((None, 1 + bb * T2, H), lambda i: (i, 0, 0)),
            pl.BlockSpec((None, bb * T3, H), lambda i: (i, 0, 0)),
            pl.BlockSpec((None, bb, 1), lambda i: (i, 0, 0)),
        ),
        compiler_params=pltpu.CompilerParams(
            dimension_semantics=("parallel",)),
    )(x_stage, packed["w1"], packed["w2"], packed["w3"], packed["prm"],
      packed["advw"], packed["sel"])

    # Strip pad rows and restore the NCT contract of the PyTorch module.
    def to_nct(hp, t_out, padded):
        body = hp[:, 1:, :] if padded else hp
        return jnp.transpose(body.reshape(B, t_out, H), (0, 2, 1))

    h = [to_nct(h1p, T1, True), to_nct(h2p, T2, True), to_nct(h3f, T3, False)]
    return v.reshape(B, 1), h


# -----------------------------------------------------------------------------
# Parameter init (deterministic, synthetic — mirrors PyTorch module shapes)
# -----------------------------------------------------------------------------
def init_params(key, time_length=16, kernel_size=3, in_dim=4, hidden_size=32):
    assert time_length >= 8 and time_length % 8 == 0
    ks = jax.random.split(key, 16)
    eps = 0.8  # nn.BatchNorm1d(out_filters, 0.8): second positional arg is eps

    def conv_init(kw, kb, cin, cout):
        fan_in = cin * kernel_size
        bound = 1.0 / jnp.sqrt(fan_in)
        w = jax.random.uniform(kw, (cout, cin, kernel_size), jnp.float32, -bound, bound)
        b = jax.random.uniform(kb, (cout,), jnp.float32, -bound, bound)
        return w, b

    def bn_affine(kg, kb, km, kv, c):
        gamma = 1.0 + 0.1 * jax.random.normal(kg, (c,), jnp.float32)
        beta = 0.1 * jax.random.normal(kb, (c,), jnp.float32)
        r_mean = 0.1 * jax.random.normal(km, (c,), jnp.float32)
        r_var = 1.0 + 0.1 * jax.random.uniform(kv, (c,), jnp.float32)
        scale = gamma / jnp.sqrt(r_var + eps)
        shift = beta - r_mean * scale
        return scale, shift

    p = {}
    p["w1"], p["b1"] = conv_init(ks[0], ks[1], in_dim, hidden_size)
    p["w2"], p["b2"] = conv_init(ks[2], ks[3], hidden_size, hidden_size)
    p["s2"], p["t2"] = bn_affine(ks[4], ks[5], ks[6], ks[7], hidden_size)
    p["w3"], p["b3"] = conv_init(ks[8], ks[9], hidden_size, hidden_size)
    p["s3"], p["t3"] = bn_affine(ks[10], ks[11], ks[12], ks[13], hidden_size)

    ds_size = time_length // 2 ** 3
    feat = hidden_size * ds_size
    bound = 1.0 / jnp.sqrt(feat)
    p["adv_w"] = jax.random.uniform(ks[14], (1, feat), jnp.float32, -bound, bound)
    p["adv_b"] = jax.random.uniform(ks[15], (1,), jnp.float32, -bound, bound)
    return p


# -----------------------------------------------------------------------------
# Pure-JAX reference (for correctness check only; matches PyTorch semantics)
# -----------------------------------------------------------------------------
def _ref_conv_block(x, w, b, scale=None, shift=None):
    B, C_in, T = x.shape
    C_out, _, K = w.shape
    pad = K // 2
    T_out = (T + 2 * pad - K) // 2 + 1
    x_pad = jnp.pad(x, ((0, 0), (0, 0), (pad, pad)))
    idx = 2 * jnp.arange(T_out)[:, None] + jnp.arange(K)[None, :]
    patches = x_pad[:, :, idx].transpose(0, 2, 1, 3).reshape(B * T_out, C_in * K)
    y = jnp.dot(patches, w.reshape(C_out, C_in * K).T, precision="highest") + b[None, :]
    y = jnp.where(y >= 0, y, 0.2 * y)
    if scale is not None:
        y = y * scale[None, :] + shift[None, :]
    return y.reshape(B, T_out, C_out).transpose(0, 2, 1)


def _reference_forward(x, p):
    h = []
    a = _ref_conv_block(x, p["w1"], p["b1"])
    h.append(a)
    a = _ref_conv_block(a, p["w2"], p["b2"], p["s2"], p["t2"])
    h.append(a)
    a = _ref_conv_block(a, p["w3"], p["b3"], p["s3"], p["t3"])
    h.append(a)
    B, C, T = a.shape
    validity = jnp.dot(a.reshape(B, C * T), p["adv_w"].T,
                       precision="highest") + p["adv_b"][None, :]
    return validity, h


# -----------------------------------------------------------------------------
if __name__ == "__main__":
    B, C, T = 2, 4, 16          # batch, in_dim, time_length
    hidden = 32
    NUM_BATCH_BLOCKS = 1        # 1 on v5e/v6e; set to 2 on v7x (2 TensorCores)

    key = jax.random.PRNGKey(0)
    kx, kp = jax.random.split(key)
    x = jax.random.normal(kx, (B, C, T), dtype=jnp.float32)
    params = init_params(kp, time_length=T, kernel_size=3, in_dim=C,
                         hidden_size=hidden)

    # One-time packing (kept out of the jit'd hot path, per perf review).
    packed = pack_params(params, batch_block=B // NUM_BATCH_BLOCKS)

    fwd = jax.jit(discriminator_forward)
    validity, h = jax.block_until_ready(fwd(x, packed))

    # Shape / sanity checks.
    assert validity.shape == (B, 1)
    assert h[0].shape == (B, hidden, T // 2)
    assert h[1].shape == (B, hidden, T // 4)
    assert h[2].shape == (B, hidden, T // 8)
    assert bool(jnp.all(jnp.isfinite(validity)))

    # Numerical check against the pure-JAX reference of the same module.
    # Tolerance is rtol-dominated: in-kernel f32 dots may use MXU multi-pass
    # rounding that differs from the XLA precision="highest" reference; any
    # indexing/layout regression produces O(0.1-1) errors and is still caught.
    v_ref, h_ref = _reference_forward(x, params)
    assert bool(jnp.allclose(validity, v_ref, atol=1e-3, rtol=1e-2)), \
        float(jnp.max(jnp.abs(validity - v_ref)))
    for a_k, a_r in zip(h, h_ref):
        assert bool(jnp.allclose(a_k, a_r, atol=1e-3, rtol=1e-2)), \
            float(jnp.max(jnp.abs(a_k - a_r)))

    print("KERNEL_OK")
</pallas_src>

<mosaic_0001>
module attributes {stable_mosaic.version = 11 : i64} {
  func.func @_disc_fused_kernel(%arg0: i32, %arg1: memref<1x33x4xf32, #tpu.memory_space<vmem>>, %arg2: memref<3x4x32xf32, #tpu.memory_space<vmem>>, %arg3: memref<3x32x32xf32, #tpu.memory_space<vmem>>, %arg4: memref<3x32x32xf32, #tpu.memory_space<vmem>>, %arg5: memref<8x32xf32, #tpu.memory_space<vmem>>, %arg6: memref<4x32xf32, #tpu.memory_space<vmem>>, %arg7: memref<2x4xf32, #tpu.memory_space<vmem>>, %arg8: memref<1x17x32xf32, #tpu.memory_space<vmem>>, %arg9: memref<1x9x32xf32, #tpu.memory_space<vmem>>, %arg10: memref<1x4x32xf32, #tpu.memory_space<vmem>>, %arg11: memref<1x2x1xf32, #tpu.memory_space<vmem>>) attributes {dimension_semantics = [#tpu.dimension_semantics<parallel>], iteration_bounds = array<i64: 1>, scalar_prefetch = 0 : i64, scratch_operands = 0 : i64, tpu.core_type = #tpu.core_type<tc>, window_params = [{transform_indices = @transform_0, window_bounds = array<i64: 1, 33, 4>}, {pipeline_mode = #tpu.pipeline_mode<synchronous>, transform_indices = @transform_1, window_bounds = array<i64: 3, 4, 32>}, {pipeline_mode = #tpu.pipeline_mode<synchronous>, transform_indices = @transform_2, window_bounds = array<i64: 3, 32, 32>}, {pipeline_mode = #tpu.pipeline_mode<synchronous>, transform_indices = @transform_3, window_bounds = array<i64: 3, 32, 32>}, {pipeline_mode = #tpu.pipeline_mode<synchronous>, transform_indices = @transform_4, window_bounds = array<i64: 8, 32>}, {pipeline_mode = #tpu.pipeline_mode<synchronous>, transform_indices = @transform_5, window_bounds = array<i64: 4, 32>}, {pipeline_mode = #tpu.pipeline_mode<synchronous>, transform_indices = @transform_6, window_bounds = array<i64: 2, 4>}, {transform_indices = @transform_7, window_bounds = array<i64: 1, 17, 32>}, {transform_indices = @transform_8, window_bounds = array<i64: 1, 9, 32>}, {transform_indices = @transform_9, window_bounds = array<i64: 1, 4, 32>}, {transform_indices = @transform_10, window_bounds = array<i64: 1, 2, 1>}]} {
    %cst = arith.constant 0.000000e+00 : f32
    %0 = vector.broadcast %cst : f32 to vector<1x32xf32>
    %c0 = arith.constant 0 : index
    %c0_0 = arith.constant 0 : index
    %1 = vector.load %arg5[%c0, %c0_0] : memref<8x32xf32, #tpu.memory_space<vmem>>, vector<1x32xf32>
    %c0_1 = arith.constant 0 : index
    %c0_2 = arith.constant 0 : index
    %c0_3 = arith.constant 0 : index
    %2 = tpu.strided_load %arg1[%c0_1, %c0_2, %c0_3] {strides = array<i32: 1, 2, 1>} : memref<1x33x4xf32, #tpu.memory_space<vmem>>, vector<1x16x4xf32>
    %3 = vector.shape_cast %2 : vector<1x16x4xf32> to vector<16x4xf32>
    %c0_4 = arith.constant 0 : index
    %c1 = arith.constant 1 : index
    %c0_5 = arith.constant 0 : index
    %4 = tpu.strided_load %arg1[%c0_4, %c1, %c0_5] {strides = array<i32: 1, 2, 1>} : memref<1x33x4xf32, #tpu.memory_space<vmem>>, vector<1x16x4xf32>
    %5 = vector.shape_cast %4 : vector<1x16x4xf32> to vector<16x4xf32>
    %c0_6 = arith.constant 0 : index
    %c2 = arith.constant 2 : index
    %c0_7 = arith.constant 0 : index
    %6 = tpu.strided_load %arg1[%c0_6, %c2, %c0_7] {strides = array<i32: 1, 2, 1>} : memref<1x33x4xf32, #tpu.memory_space<vmem>>, vector<1x16x4xf32>
    %7 = vector.shape_cast %6 : vector<1x16x4xf32> to vector<16x4xf32>
    %8 = tpu.iota {dimensions = array<i32: 0>} : vector<16x4xi32>
    %c8_i32 = arith.constant 8 : i32
    %c0_i32 = arith.constant 0 : i32
    %9 = arith.cmpi eq, %c8_i32, %c0_i32 : i32
    %c1_i32 = arith.constant 1 : i32
    %10 = arith.select %9, %c1_i32, %c8_i32 : i32
    %11 = vector.broadcast %10 : i32 to vector<16x4xi32>
    %12 = arith.remsi %8, %11 : vector<16x4xi32>
    %c0_i32_8 = arith.constant 0 : i32
    %13 = vector.broadcast %c0_i32_8 : i32 to vector<16x4xi32>
    %14 = arith.cmpi ne, %12, %13 : vector<16x4xi32>
    %c0_i32_9 = arith.constant 0 : i32
    %15 = vector.broadcast %c0_i32_9 : i32 to vector<16x4xi32>
    %16 = arith.cmpi slt, %12, %15 : vector<16x4xi32>
    %c0_i32_10 = arith.constant 0 : i32
    %17 = arith.cmpi slt, %10, %c0_i32_10 : i32
    %18 = vector.broadcast %17 : i1 to vector<16x4xi1>
    %19 = vector.broadcast %18 : vector<16x4xi1> to vector<16x4xi1>
    %20 = arith.xori %16, %19 : vector<16x4xi1>
    %21 = arith.andi %20, %14 : vector<16x4xi1>
    %22 = vector.broadcast %10 : i32 to vector<16x4xi32>
    %23 = arith.addi %12, %22 : vector<16x4xi32>
    %24 = arith.select %21, %23, %12 : vector<16x4xi1>, vector<16x4xi32>
    %c0_i32_11 = arith.constant 0 : i32
    %25 = vector.broadcast %c0_i32_11 : i32 to vector<16x4xi32>
    %26 = arith.cmpi ne, %24, %25 : vector<16x4xi32>
    %cst_12 = arith.constant 0.000000e+00 : f32
    %27 = vector.broadcast %cst_12 : f32 to vector<16x4xf32>
    %28 = arith.select %26, %3, %27 : vector<16x4xi1>, vector<16x4xf32>
    %c0_13 = arith.constant 0 : index
    %c0_14 = arith.constant 0 : index
    %c0_15 = arith.constant 0 : index
    %29 = vector.load %arg2[%c0_13, %c0_14, %c0_15] : memref<3x4x32xf32, #tpu.memory_space<vmem>>, vector<1x4x32xf32>
    %30 = vector.shape_cast %29 : vector<1x4x32xf32> to vector<4x32xf32>
    %cst_16 = arith.constant dense<0.000000e+00> : vector<16x32xf32>
    %31 = tpu.matmul %28, %30, %cst_16 {dimension_numbers = #tpu.dot_dimension_numbers<[1], [0], [0], [1], [0, 0, 1, 1], [], []>} : vector<16x4xf32>, vector<4x32xf32>, vector<16x32xf32> -> vector<16x32xf32>
    %c1_17 = arith.constant 1 : index
    %c0_18 = arith.constant 0 : index
    %c0_19 = arith.constant 0 : index
    %32 = vector.load %arg2[%c1_17, %c0_18, %c0_19] : memref<3x4x32xf32, #tpu.memory_space<vmem>>, vector<1x4x32xf32>
    %33 = vector.shape_cast %32 : vector<1x4x32xf32> to vector<4x32xf32>
    %cst_20 = arith.constant dense<0.000000e+00> : vector<16x32xf32>
    %34 = tpu.matmul %5, %33, %cst_20 {dimension_numbers = #tpu.dot_dimension_numbers<[1], [0], [0], [1], [0, 0, 1, 1], [], []>} : vector<16x4xf32>, vector<4x32xf32>, vector<16x32xf32> -> vector<16x32xf32>
    %35 = arith.addf %31, %34 : vector<16x32xf32>
    %c2_21 = arith.constant 2 : index
    %c0_22 = arith.constant 0 : index
    %c0_23 = arith.constant 0 : index
    %36 = vector.load %arg2[%c2_21, %c0_22, %c0_23] : memref<3x4x32xf32, #tpu.memory_space<vmem>>, vector<1x4x32xf32>
    %37 = vector.shape_cast %36 : vector<1x4x32xf32> to vector<4x32xf32>
    %cst_24 = arith.constant dense<0.000000e+00> : vector<16x32xf32>
    %38 = tpu.matmul %7, %37, %cst_24 {dimension_numbers = #tpu.dot_dimension_numbers<[1], [0], [0], [1], [0, 0, 1, 1], [], []>} : vector<16x4xf32>, vector<4x32xf32>, vector<16x32xf32> -> vector<16x32xf32>
    %39 = arith.addf %35, %38 : vector<16x32xf32>
    %40 = vector.broadcast %1 : vector<1x32xf32> to vector<16x32xf32>
    %41 = arith.addf %39, %40 : vector<16x32xf32>
    %cst_25 = arith.constant 0.000000e+00 : f32
    %42 = vector.broadcast %cst_25 : f32 to vector<16x32xf32>
    %43 = arith.cmpf oge, %41, %42 : vector<16x32xf32>
    %cst_26 = arith.constant 2.000000e-01 : f32
    %44 = vector.broadcast %cst_26 : f32 to vector<16x32xf32>
    %45 = arith.mulf %44, %41 : vector<16x32xf32>
    %46 = arith.select %43, %41, %45 : vector<16x32xi1>, vector<16x32xf32>
    %c0_27 = arith.constant 0 : index
    %c0_28 = arith.constant 0 : index
    %c0_29 = arith.constant 0 : index
    %47 = vector.load %arg8[%c0_27, %c0_28, %c0_29] : memref<1x17x32xf32, #tpu.memory_space<vmem>>, vector<1x1x32xf32>
    %48 = vector.shape_cast %47 : vector<1x1x32xf32> to vector<1x32xf32>
    %49 = vector.shape_cast %0 : vector<1x32xf32> to vector<1x1x32xf32>
    tpu.vector_store %arg8[%c0_27, %c0_28, %c0_29], %49 {strides = array<i32>} : memref<1x17x32xf32, #tpu.memory_space<vmem>>, vector<1x1x32xf32>,
    %c0_30 = arith.constant 0 : index
    %c1_31 = arith.constant 1 : index
    %c0_32 = arith.constant 0 : index
    %50 = vector.load %arg8[%c0_30, %c1_31, %c0_32] : memref<1x17x32xf32, #tpu.memory_space<vmem>>, vector<1x16x32xf32>
    %51 = vector.shape_cast %50 : vector<1x16x32xf32> to vector<16x32xf32>
    %52 = vector.shape_cast %46 : vector<16x32xf32> to vector<1x16x32xf32>
    tpu.vector_store %arg8[%c0_30, %c1_31, %c0_32], %52 {strides = array<i32>} : memref<1x17x32xf32, #tpu.memory_space<vmem>>, vector<1x16x32xf32>,
    %c1_33 = arith.constant 1 : index
    %c0_34 = arith.constant 0 : index
    %53 = vector.load %arg5[%c1_33, %c0_34] : memref<8x32xf32, #tpu.memory_space<vmem>>, vector<1x32xf32>
    %c2_35 = arith.constant 2 : index
    %c0_36 = arith.constant 0 : index
    %54 = vector.load %arg5[%c2_35, %c0_36] : memref<8x32xf32, #tpu.memory_space<vmem>>, vector<1x32xf32>
    %c3 = arith.constant 3 : index
    %c0_37 = arith.constant 0 : index
    %55 = vector.load %arg5[%c3, %c0_37] : memref<8x32xf32, #tpu.memory_space<vmem>>, vector<1x32xf32>
    %c0_38 = arith.constant 0 : index
    %c0_39 = arith.constant 0 : index
    %c0_40 = arith.constant 0 : index
    %56 = tpu.strided_load %arg8[%c0_38, %c0_39, %c0_40] {strides = array<i32: 1, 2, 1>} : memref<1x17x32xf32, #tpu.memory_space<vmem>>, vector<1x8x32xf32>
    %57 = vector.shape_cast %56 : vector<1x8x32xf32> to vector<8x32xf32>
    %c0_41 = arith.constant 0 : index
    %c1_42 = arith.constant 1 : index
    %c0_43 = arith.constant 0 : index
    %58 = tpu.strided_load %arg8[%c0_41, %c1_42, %c0_43] {strides = array<i32: 1, 2, 1>} : memref<1x17x32xf32, #tpu.memory_space<vmem>>, vector<1x8x32xf32>
    %59 = vector.shape_cast %58 : vector<1x8x32xf32> to vector<8x32xf32>
    %c0_44 = arith.constant 0 : index
    %c2_45 = arith.constant 2 : index
    %c0_46 = arith.constant 0 : index
    %60 = tpu.strided_load %arg8[%c0_44, %c2_45, %c0_46] {strides = array<i32: 1, 2, 1>} : memref<1x17x32xf32, #tpu.memory_space<vmem>>, vector<1x8x32xf32>
    %61 = vector.shape_cast %60 : vector<1x8x32xf32> to vector<8x32xf32>
    %62 = tpu.iota {dimensions = array<i32: 0>} : vector<8x32xi32>
    %c4_i32 = arith.constant 4 : i32
    %c0_i32_47 = arith.constant 0 : i32
    %63 = arith.cmpi eq, %c4_i32, %c0_i32_47 : i32
    %c1_i32_48 = arith.constant 1 : i32
    %64 = arith.select %63, %c1_i32_48, %c4_i32 : i32
    %65 = vector.broadcast %64 : i32 to vector<8x32xi32>
    %66 = arith.remsi %62, %65 : vector<8x32xi32>
    %c0_i32_49 = arith.constant 0 : i32
    %67 = vector.broadcast %c0_i32_49 : i32 to vector<8x32xi32>
    %68 = arith.cmpi ne, %66, %67 : vector<8x32xi32>
    %c0_i32_50 = arith.constant 0 : i32
    %69 = vector.broadcast %c0_i32_50 : i32 to vector<8x32xi32>
    %70 = arith.cmpi slt, %66, %69 : vector<8x32xi32>
    %c0_i32_51 = arith.constant 0 : i32
    %71 = arith.cmpi slt, %64, %c0_i32_51 : i32
    %72 = vector.broadcast %71 : i1 to vector<8x32xi1>
    %73 = vector.broadcast %72 : vector<8x32xi1> to vector<8x32xi1>
    %74 = arith.xori %70, %73 : vector<8x32xi1>
    %75 = arith.andi %74, %68 : vector<8x32xi1>
    %76 = vector.broadcast %64 : i32 to vector<8x32xi32>
    %77 = arith.addi %66, %76 : vector<8x32xi32>
    %78 = arith.select %75, %77, %66 : vector<8x32xi1>, vector<8x32xi32>
    %c0_i32_52 = arith.constant 0 : i32
    %79 = vector.broadcast %c0_i32_52 : i32 to vector<8x32xi32>
    %80 = arith.cmpi ne, %78, %79 : vector<8x32xi32>
    %cst_53 = arith.constant 0.000000e+00 : f32
    %81 = vector.broadcast %cst_53 : f32 to vector<8x32xf32>
    %82 = arith.select %80, %57, %81 : vector<8x32xi1>, vector<8x32xf32>
    %c0_54 = arith.constant 0 : index
    %c0_55 = arith.constant 0 : index
    %c0_56 = arith.constant 0 : index
    %83 = vector.load %arg3[%c0_54, %c0_55, %c0_56] : memref<3x32x32xf32, #tpu.memory_space<vmem>>, vector<1x32x32xf32>
    %84 = vector.shape_cast %83 : vector<1x32x32xf32> to vector<32x32xf32>
    %cst_57 = arith.constant dense<0.000000e+00> : vector<8x32xf32>
    %85 = tpu.matmul %82, %84, %cst_57 {dimension_numbers = #tpu.dot_dimension_numbers<[1], [0], [0], [1], [0, 0, 1, 1], [], []>} : vector<8x32xf32>, vector<32x32xf32>, vector<8x32xf32> -> vector<8x32xf32>
    %c1_58 = arith.constant 1 : index
    %c0_59 = arith.constant 0 : index
    %c0_60 = arith.constant 0 : index
    %86 = vector.load %arg3[%c1_58, %c0_59, %c0_60] : memref<3x32x32xf32, #tpu.memory_space<vmem>>, vector<1x32x32xf32>
    %87 = vector.shape_cast %86 : vector<1x32x32xf32> to vector<32x32xf32>
    %cst_61 = arith.constant dense<0.000000e+00> : vector<8x32xf32>
    %88 = tpu.matmul %59, %87, %cst_61 {dimension_numbers = #tpu.dot_dimension_numbers<[1], [0], [0], [1], [0, 0, 1, 1], [], []>} : vector<8x32xf32>, vector<32x32xf32>, vector<8x32xf32> -> vector<8x32xf32>
    %89 = arith.addf %85, %88 : vector<8x32xf32>
    %c2_62 = arith.constant 2 : index
    %c0_63 = arith.constant 0 : index
    %c0_64 = arith.constant 0 : index
    %90 = vector.load %arg3[%c2_62, %c0_63, %c0_64] : memref<3x32x32xf32, #tpu.memory_space<vmem>>, vector<1x32x32xf32>
    %91 = vector.shape_cast %90 : vector<1x32x32xf32> to vector<32x32xf32>
    %cst_65 = arith.constant dense<0.000000e+00> : vector<8x32xf32>
    %92 = tpu.matmul %61, %91, %cst_65 {dimension_numbers = #tpu.dot_dimension_numbers<[1], [0], [0], [1], [0, 0, 1, 1], [], []>} : vector<8x32xf32>, vector<32x32xf32>, vector<8x32xf32> -> vector<8x32xf32>
    %93 = arith.addf %89, %92 : vector<8x32xf32>
    %94 = vector.broadcast %53 : vector<1x32xf32> to vector<8x32xf32>
    %95 = arith.addf %93, %94 : vector<8x32xf32>
    %cst_66 = arith.constant 0.000000e+00 : f32
    %96 = vector.broadcast %cst_66 : f32 to vector<8x32xf32>
    %97 = arith.cmpf oge, %95, %96 : vector<8x32xf32>
    %cst_67 = arith.constant 2.000000e-01 : f32
    %98 = vector.broadcast %cst_67 : f32 to vector<8x32xf32>
    %99 = arith.mulf %98, %95 : vector<8x32xf32>
    %100 = arith.select %97, %95, %99 : vector<8x32xi1>, vector<8x32xf32>
    %101 = vector.broadcast %54 : vector<1x32xf32> to vector<8x32xf32>
    %102 = arith.mulf %100, %101 : vector<8x32xf32>
    %103 = vector.broadcast %55 : vector<1x32xf32> to vector<8x32xf32>
    %104 = arith.addf %102, %103 : vector<8x32xf32>
    %c0_68 = arith.constant 0 : index
    %c0_69 = arith.constant 0 : index
    %c0_70 = arith.constant 0 : index
    %105 = vector.load %arg9[%c0_68, %c0_69, %c0_70] : memref<1x9x32xf32, #tpu.memory_space<vmem>>, vector<1x1x32xf32>
    %106 = vector.shape_cast %105 : vector<1x1x32xf32> to vector<1x32xf32>
    %107 = vector.shape_cast %0 : vector<1x32xf32> to vector<1x1x32xf32>
    tpu.vector_store %arg9[%c0_68, %c0_69, %c0_70], %107 {strides = array<i32>} : memref<1x9x32xf32, #tpu.memory_space<vmem>>, vector<1x1x32xf32>,
    %c0_71 = arith.constant 0 : index
    %c1_72 = arith.constant 1 : index
    %c0_73 = arith.constant 0 : index
    %108 = vector.load %arg9[%c0_71, %c1_72, %c0_73] : memref<1x9x32xf32, #tpu.memory_space<vmem>>, vector<1x8x32xf32>
    %109 = vector.shape_cast %108 : vector<1x8x32xf32> to vector<8x32xf32>
    %110 = vector.shape_cast %104 : vector<8x32xf32> to vector<1x8x32xf32>
    tpu.vector_store %arg9[%c0_71, %c1_72, %c0_73], %110 {strides = array<i32>} : memref<1x9x32xf32, #tpu.memory_space<vmem>>, vector<1x8x32xf32>,
    %c4 = arith.constant 4 : index
    %c0_74 = arith.constant 0 : index
    %111 = vector.load %arg5[%c4, %c0_74] : memref<8x32xf32, #tpu.memory_space<vmem>>, vector<1x32xf32>
    %c5 = arith.constant 5 : index
    %c0_75 = arith.constant 0 : index
    %112 = vector.load %arg5[%c5, %c0_75] : memref<8x32xf32, #tpu.memory_space<vmem>>, vector<1x32xf32>
    %c6 = arith.constant 6 : index
    %c0_76 = arith.constant 0 : index
    %113 = vector.load %arg5[%c6, %c0_76] : memref<8x32xf32, #tpu.memory_space<vmem>>, vector<1x32xf32>
    %c0_77 = arith.constant 0 : index
    %c0_78 = arith.constant 0 : index
    %c0_79 = arith.constant 0 : index
    %114 = tpu.strided_load %arg9[%c0_77, %c0_78, %c0_79] {strides = array<i32: 1, 2, 1>} : memref<1x9x32xf32, #tpu.memory_space<vmem>>, vector<1x4x32xf32>
    %115 = vector.shape_cast %114 : vector<1x4x32xf32> to vector<4x32xf32>
    %c0_80 = arith.constant 0 : index
    %c1_81 = arith.constant 1 : index
    %c0_82 = arith.constant 0 : index
    %116 = tpu.strided_load %arg9[%c0_80, %c1_81, %c0_82] {strides = array<i32: 1, 2, 1>} : memref<1x9x32xf32, #tpu.memory_space<vmem>>, vector<1x4x32xf32>
    %117 = vector.shape_cast %116 : vector<1x4x32xf32> to vector<4x32xf32>
    %c0_83 = arith.constant 0 : index
    %c2_84 = arith.constant 2 : index
    %c0_85 = arith.constant 0 : index
    %118 = tpu.strided_load %arg9[%c0_83, %c2_84, %c0_85] {strides = array<i32: 1, 2, 1>} : memref<1x9x32xf32, #tpu.memory_space<vmem>>, vector<1x4x32xf32>
    %119 = vector.shape_cast %118 : vector<1x4x32xf32> to vector<4x32xf32>
    %120 = tpu.iota {dimensions = array<i32: 0>} : vector<4x32xi32>
    %c2_i32 = arith.constant 2 : i32
    %c0_i32_86 = arith.constant 0 : i32
    %121 = arith.cmpi eq, %c2_i32, %c0_i32_86 : i32
    %c1_i32_87 = arith.constant 1 : i32
    %122 = arith.select %121, %c1_i32_87, %c2_i32 : i32
    %123 = vector.broadcast %122 : i32 to vector<4x32xi32>
    %124 = arith.remsi %120, %123 : vector<4x32xi32>
    %c0_i32_88 = arith.constant 0 : i32
    %125 = vector.broadcast %c0_i32_88 : i32 to vector<4x32xi32>
    %126 = arith.cmpi ne, %124, %125 : vector<4x32xi32>
    %c0_i32_89 = arith.constant 0 : i32
    %127 = vector.broadcast %c0_i32_89 : i32 to vector<4x32xi32>
    %128 = arith.cmpi slt, %124, %127 : vector<4x32xi32>
    %c0_i32_90 = arith.constant 0 : i32
    %129 = arith.cmpi slt, %122, %c0_i32_90 : i32
    %130 = vector.broadcast %129 : i1 to vector<4x32xi1>
    %131 = vector.broadcast %130 : vector<4x32xi1> to vector<4x32xi1>
    %132 = arith.xori %128, %131 : vector<4x32xi1>
    %133 = arith.andi %132, %126 : vector<4x32xi1>
    %134 = vector.broadcast %122 : i32 to vector<4x32xi32>
    %135 = arith.addi %124, %134 : vector<4x32xi32>
    %136 = arith.select %133, %135, %124 : vector<4x32xi1>, vector<4x32xi32>
    %c0_i32_91 = arith.constant 0 : i32
    %137 = vector.broadcast %c0_i32_91 : i32 to vector<4x32xi32>
    %138 = arith.cmpi ne, %136, %137 : vector<4x32xi32>
    %cst_92 = arith.constant 0.000000e+00 : f32
    %139 = vector.broadcast %cst_92 : f32 to vector<4x32xf32>
    %140 = arith.select %138, %115, %139 : vector<4x32xi1>, vector<4x32xf32>
    %c0_93 = arith.constant 0 : index
    %c0_94 = arith.constant 0 : index
    %c0_95 = arith.constant 0 : index
    %141 = vector.load %arg4[%c0_93, %c0_94, %c0_95] : memref<3x32x32xf32, #tpu.memory_space<vmem>>, vector<1x32x32xf32>
    %142 = vector.shape_cast %141 : vector<1x32x32xf32> to vector<32x32xf32>
    %cst_96 = arith.constant dense<0.000000e+00> : vector<4x32xf32>
    %143 = tpu.matmul %140, %142, %cst_96 {dimension_numbers = #tpu.dot_dimension_numbers<[1], [0], [0], [1], [0, 0, 1, 1], [], []>} : vector<4x32xf32>, vector<32x32xf32>, vector<4x32xf32> -> vector<4x32xf32>
    %c1_97 = arith.constant 1 : index
    %c0_98 = arith.constant 0 : index
    %c0_99 = arith.constant 0 : index
    %144 = vector.load %arg4[%c1_97, %c0_98, %c0_99] : memref<3x32x32xf32, #tpu.memory_space<vmem>>, vector<1x32x32xf32>
    %145 = vector.shape_cast %144 : vector<1x32x32xf32> to vector<32x32xf32>
    %cst_100 = arith.constant dense<0.000000e+00> : vector<4x32xf32>
    %146 = tpu.matmul %117, %145, %cst_100 {dimension_numbers = #tpu.dot_dimension_numbers<[1], [0], [0], [1], [0, 0, 1, 1], [], []>} : vector<4x32xf32>, vector<32x32xf32>, vector<4x32xf32> -> vector<4x32xf32>
    %147 = arith.addf %143, %146 : vector<4x32xf32>
    %c2_101 = arith.constant 2 : index
    %c0_102 = arith.constant 0 : index
    %c0_103 = arith.constant 0 : index
    %148 = vector.load %arg4[%c2_101, %c0_102, %c0_103] : memref<3x32x32xf32, #tpu.memory_space<vmem>>, vector<1x32x32xf32>
    %149 = vector.shape_cast %148 : vector<1x32x32xf32> to vector<32x32xf32>
    %cst_104 = arith.constant dense<0.000000e+00> : vector<4x32xf32>
    %150 = tpu.matmul %119, %149, %cst_104 {dimension_numbers = #tpu.dot_dimension_numbers<[1], [0], [0], [1], [0, 0, 1, 1], [], []>} : vector<4x32xf32>, vector<32x32xf32>, vector<4x32xf32> -> vector<4x32xf32>
    %151 = arith.addf %147, %150 : vector<4x32xf32>
    %152 = vector.broadcast %111 : vector<1x32xf32> to vector<4x32xf32>
    %153 = arith.addf %151, %152 : vector<4x32xf32>
    %cst_105 = arith.constant 0.000000e+00 : f32
    %154 = vector.broadcast %cst_105 : f32 to vector<4x32xf32>
    %155 = arith.cmpf oge, %153, %154 : vector<4x32xf32>
    %cst_106 = arith.constant 2.000000e-01 : f32
    %156 = vector.broadcast %cst_106 : f32 to vector<4x32xf32>
    %157 = arith.mulf %156, %153 : vector<4x32xf32>
    %158 = arith.select %155, %153, %157 : vector<4x32xi1>, vector<4x32xf32>
    %159 = vector.broadcast %112 : vector<1x32xf32> to vector<4x32xf32>
    %160 = arith.mulf %158, %159 : vector<4x32xf32>
    %161 = vector.broadcast %113 : vector<1x32xf32> to vector<4x32xf32>
    %162 = arith.addf %160, %161 : vector<4x32xf32>
    %c0_107 = arith.constant 0 : index
    %c0_108 = arith.constant 0 : index
    %c0_109 = arith.constant 0 : index
    %163 = vector.load %arg10[%c0_107, %c0_108, %c0_109] : memref<1x4x32xf32, #tpu.memory_space<vmem>>, vector<1x4x32xf32>
    %164 = vector.shape_cast %163 : vector<1x4x32xf32> to vector<4x32xf32>
    %165 = vector.shape_cast %162 : vector<4x32xf32> to vector<1x4x32xf32>
    tpu.vector_store %arg10[%c0_107, %c0_108, %c0_109], %165 {strides = array<i32>} : memref<1x4x32xf32, #tpu.memory_space<vmem>>, vector<1x4x32xf32>,
    %c0_110 = arith.constant 0 : index
    %c0_111 = arith.constant 0 : index
    %166 = vector.load %arg6[%c0_110, %c0_111] : memref<4x32xf32, #tpu.memory_space<vmem>>, vector<4x32xf32>
    %167 = arith.mulf %162, %166 : vector<4x32xf32>
    %c0_112 = arith.constant 0 : index
    %c0_113 = arith.constant 0 : index
    %168 = vector.load %arg7[%c0_112, %c0_113] : memref<2x4xf32, #tpu.memory_space<vmem>>, vector<2x4xf32>
    %cst_114 = arith.constant dense<0.000000e+00> : vector<2x32xf32>
    %169 = tpu.matmul %168, %167, %cst_114 {dimension_numbers = #tpu.dot_dimension_numbers<[1], [0], [0], [1], [0, 0, 1, 1], [], []>} : vector<2x4xf32>, vector<4x32xf32>, vector<2x32xf32> -> vector<2x32xf32>
    %cst_115 = arith.constant dense<0.000000e+00> : vector<2xf32>
    %170 = vector.multi_reduction <add>, %169, %cst_115 [1] : vector<2x32xf32> to vector<2xf32>
    %171 = vector.shape_cast %170 : vector<2xf32> to vector<2x1xf32>
    %c7 = arith.constant 7 : index
    %c0_116 = arith.constant 0 : index
    %172 = vector.load %arg5[%c7, %c0_116] : memref<8x32xf32, #tpu.memory_space<vmem>>, vector<1x1xf32>
    %173 = vector.broadcast %172 : vector<1x1xf32> to vector<2x1xf32>
    %174 = arith.addf %171, %173 : vector<2x1xf32>
    %c0_117 = arith.constant 0 : index
    %c0_118 = arith.constant 0 : index
    %c0_119 = arith.constant 0 : index
    %175 = vector.load %arg11[%c0_117, %c0_118, %c0_119] : memref<1x2x1xf32, #tpu.memory_space<vmem>>, vector<1x2x1xf32>
    %176 = vector.shape_cast %175 : vector<1x2x1xf32> to vector<2x1xf32>
    %177 = vector.shape_cast %174 : vector<2x1xf32> to vector<1x2x1xf32>
    tpu.vector_store %arg11[%c0_117, %c0_118, %c0_119], %177 {strides = array<i32>} : memref<1x2x1xf32, #tpu.memory_space<vmem>>, vector<1x2x1xf32>,
    return
  }
  func.func @transform_0(%arg0: i32) -> (i32, i32, i32) {
    %c0_i32 = arith.constant 0 : i32
    %c0_i32_0 = arith.constant 0 : i32
    %c0_i32_1 = arith.constant 0 : i32
    return %arg0, %c0_i32, %c0_i32_0 : i32, i32, i32
  }
  func.func @transform_1(%arg0: i32) -> (i32, i32, i32) {
    %c0_i32 = arith.constant 0 : i32
    %c0_i32_0 = arith.constant 0 : i32
    %c0_i32_1 = arith.constant 0 : i32
    %c0_i32_2 = arith.constant 0 : i32
    return %c0_i32, %c0_i32_0, %c0_i32_1 : i32, i32, i32
  }
  func.func @transform_2(%arg0: i32) -> (i32, i32, i32) {
    %c0_i32 = arith.constant 0 : i32
    %c0_i32_0 = arith.constant 0 : i32
    %c0_i32_1 = arith.constant 0 : i32
    %c0_i32_2 = arith.constant 0 : i32
    return %c0_i32, %c0_i32_0, %c0_i32_1 : i32, i32, i32
  }
  func.func @transform_3(%arg0: i32) -> (i32, i32, i32) {
    %c0_i32 = arith.constant 0 : i32
    %c0_i32_0 = arith.constant 0 : i32
    %c0_i32_1 = arith.constant 0 : i32
    %c0_i32_2 = arith.constant 0 : i32
    return %c0_i32, %c0_i32_0, %c0_i32_1 : i32, i32, i32
  }
  func.func @transform_4(%arg0: i32) -> (i32, i32) {
    %c0_i32 = arith.constant 0 : i32
    %c0_i32_0 = arith.constant 0 : i32
    %c0_i32_1 = arith.constant 0 : i32
    return %c0_i32, %c0_i32_0 : i32, i32
  }
  func.func @transform_5(%arg0: i32) -> (i32, i32) {
    %c0_i32 = arith.constant 0 : i32
    %c0_i32_0 = arith.constant 0 : i32
    %c0_i32_1 = arith.constant 0 : i32
    return %c0_i32, %c0_i32_0 : i32, i32
  }
  func.func @transform_6(%arg0: i32) -> (i32, i32) {
    %c0_i32 = arith.constant 0 : i32
    %c0_i32_0 = arith.constant 0 : i32
    %c0_i32_1 = arith.constant 0 : i32
    return %c0_i32, %c0_i32_0 : i32, i32
  }
  func.func @transform_7(%arg0: i32) -> (i32, i32, i32) {
    %c0_i32 = arith.constant 0 : i32
    %c0_i32_0 = arith.constant 0 : i32
    %c0_i32_1 = arith.constant 0 : i32
    return %arg0, %c0_i32, %c0_i32_0 : i32, i32, i32
  }
  func.func @transform_8(%arg0: i32) -> (i32, i32, i32) {
    %c0_i32 = arith.constant 0 : i32
    %c0_i32_0 = arith.constant 0 : i32
    %c0_i32_1 = arith.constant 0 : i32
    return %arg0, %c0_i32, %c0_i32_0 : i32, i32, i32
  }
  func.func @transform_9(%arg0: i32) -> (i32, i32, i32) {
    %c0_i32 = arith.constant 0 : i32
    %c0_i32_0 = arith.constant 0 : i32
    %c0_i32_1 = arith.constant 0 : i32
    return %arg0, %c0_i32, %c0_i32_0 : i32, i32, i32
  }
  func.func @transform_10(%arg0: i32) -> (i32, i32, i32) {
    %c0_i32 = arith.constant 0 : i32
    %c0_i32_0 = arith.constant 0 : i32
    %c0_i32_1 = arith.constant 0 : i32
    return %arg0, %c0_i32, %c0_i32_0 : i32, i32, i32
  }
}

</mosaic_0001>

<bundles_post_ra>
// kernel: discriminator_forward.1
= control target key start
LH: loop header
LB: loop body
LE: loop exit
PB: predicated region body
PF: predicated region fallthrough
CT: control target
= control target key end

     0   :  { %16 = vsyncpa [#allocation3], 0  ;;  %s1581_s0 = inlined_call_operand.vmem [shape: f32[1,33,4], index: 0, kind: input, shape index: {}]   ;;  %s1582_s1 = inlined_call_operand.vmem [shape: f32[3,4,32], index: 1, kind: input, shape index: {}]   ;;  %s1583_s2 = inlined_call_operand.vmem [shape: f32[3,32,32], index: 2, kind: input, shape index: {}]   ;;  %s1584_s3 = inlined_call_operand.hbm [shape: f32[3,32,32], index: 3, kind: input, shape index: {}]   ;;  %s1585_s4 = inlined_call_operand.vmem [shape: f32[8,32], index: 4, kind: input, shape index: {}]   ;;  %s1586_s5 = inlined_call_operand.vmem [shape: f32[4,32], index: 5, kind: input, shape index: {}]   ;;  %s1587_s6 = inlined_call_operand.vmem [shape: f32[2,4], index: 6, kind: input, shape index: {}]   ;;  %s1588_s7 = inlined_call_operand.vmem [shape: f32[1,17,32], index: 7, kind: output, shape index: {0}]   ;;  %s1589_s8 = inlined_call_operand.vmem [shape: f32[1,9,32], index: 8, kind: output, shape index: {1}]   ;;  %s1590_s9 = inlined_call_operand.hbm [shape: f32[1,4,32], index: 9, kind: output, shape index: {2}]   ;;  %s1591_s10 = inlined_call_operand.vmem [shape: f32[1,2,1], index: 10, kind: output, shape index: {3}]  }
   0x1   :  { %17 = vsyncpa [#allocation4], 0  ;;  %s1302_s13 = smov [#allocation2]   ;;  %s1254_s17 = scalar_lea.hbm %s1584_s3, 1536 }
   0x2   :  { %s29_s14 = sshll.u32 %s1302_s13, 4  ;;  %p1255_p0 = scmp.ne.s32.totalorder %s1584_s3, %s1254_s17  ;;  %s30_s14 = int_to_ptr.vmem [resolvable:$true] %s29_s14 }
   0x3   :  { %p1258_p1 = scmp.lt.u32.totalorder %s1254_s17, %s1584_s3 }
   0x5   :  { %p1260_p2 = pnand %p1258_p1, %p1255_p0 }
   0x7   :  { %1263 = shalt.err (!%p1260_p2)
}
   0x8   :  { %s1264_s22 = scalar_lea.vmem %s30_s14, 1536  ;;  %p1269_p4 = scmp.lt.s32.totalorder %s30_s14, %s30_s14 }
   0x9   :  { %p1265_p3 = scmp.ne.s32.totalorder %s30_s14, %s1264_s22  ;;  %p1270_p5 = scmp.lt.s32.totalorder %s1264_s22, %s1264_s22 }
   0xb   :  { %p1271_p6 = por %p1270_p5, %p1269_p4 }
   0xd   :  { %p1272_p7 = pnand %p1271_p6, %p1265_p3 }
   0xf   :  { %1275 = shalt.err (!%p1272_p7)
}
  0x10   :  { %s1303_s23 = smov 128   ;;  %s1304_s24 = smov 8  }
  0x11   :  { %35 = dma.hbm_to_vmem [thread:$0]  %s1584_s3, 1536, %s30_s14, [#allocation3], %s1303_s23, %s1303_s23, %s1304_s24  }
  0x12   :  { %1298 = dma.done.wait [#allocation3], 1536  }
  0x13   :  { %1299 = vsyncadd [#allocation3], 4294965760  ;;  %v57_v0 = vlaneseq  ;;  %vm98_vm0 = vcmask 1043456   ;;  %vm91_vm1 = vcmask 31744   ;;  %v1041_v5 = vld [vmem:[%s1582_s1 + $0x4] sm:$0xf] }
  0x14   :  { %v1037_v6 = vld [vmem:[%s1581_s0 + $0x1] ss:$2 sm:$0xff]  ;;  %v1038_v7 = vld [vmem:[%s1581_s0 + $0x11] ss:$2 sm:$0xff]  ;;  %1121 = vmatprep.subr.msk.mxu0 %vm98_vm0, %v1041_v5  ;;  %v46_v9 = vld [vmem:[%s1581_s0] ss:$2 sm:$0xff] }
  0x15   :  { %v1376_v1 = vshrl.u32 %v57_v0, 7  ;;  %1123 = vmatprep.mubr.msk.f32.mxu0 %vm91_vm1, %v1037_v6  ;;  %v88_v8 = vld [vmem:[%s1582_s1] sm:$0xf]  ;;  %1122 = vmatpush3.msk.msra.mxu0 %vm98_vm0, %v1041_v5  ;;  %v1048_v12 = vld [vmem:[%s1582_s1 + $0x8] sm:$0xf]  ;;  %v1305_v22 = vmov 0.0|0.0  }
  0x16   :  { %1124 = vmatmul.mubr.msk.f32.vlgmr.msra.gmra.mrb[0].mxu0 %vm91_vm1, %v1038_v7  ;;  %1126 = vmatprep.subr.msk.mxu0 %vm98_vm0, %v88_v8  ;;  %v1036_v13 = vld [vmem:[%s1581_s0 + $0x10] ss:$2 sm:$0xff]  ;;  %v1055_v17 = vld [vmem:[%s1583_s2 + $0x20] sm:$0xff]  ;;  %v1056_v18 = vld [vmem:[%s1583_s2 + $0x28] sm:$0xff]  ;;  %vm361_vm4 = vcmask 253952   ;;  %v1306_v29 = vmov 0.0  }
  0x17   :  { %v64_v2 = vand.u32 7, %v1376_v1  ;;  %v59_v3 = vadd.s32 8, %v1376_v1  ;;  %1127 = vmatpush3.msk.msra.mxu0 %vm98_vm0, %v88_v8  ;;  %v1039_v15 = vld [vmem:[%s1581_s0 + $0x2] ss:$2 sm:$0xff]  ;;  %v1040_v16 = vld [vmem:[%s1581_s0 + $0x12] ss:$2 sm:$0xff]  ;;  %v1208_v19 = vpack.c.bf16 %v1056_v18, %v1055_v17  ;;  %1207 = vmatprep.subr.bf16.mxu1 %v1305_v22 }
  0x18   :  { %1131 = vmatprep.subr.msk.mxu0 %vm98_vm0, %v1048_v12  ;;  %v1061_v20 = vld [vmem:[%s1583_s2 + $0x40] sm:$0xff]  ;;  %v1062_v21 = vld [vmem:[%s1583_s2 + $0x48] sm:$0xff]  ;;  %v1057_v24 = vld [vmem:[%s1583_s2 + $0x30] sm:$0xff]  ;;  %362 = vst.msk [vmem:[%s1588_s7] sm:$0x1] %vm361_vm4, %v1306_v29  ;;  %vm1307_vm5 = vmmov 0  }
  0x19   :  { %vm1380_vm2 = vcmp.ne.s32.totalorder %v64_v2, 0  ;;  %v71_v10 = vand.u32 7, %v59_v3  ;;  %v1220_v23 = vpack.c.bf16 %v1062_v21, %v1061_v20  ;;  %1209 = vmatpush3.bf16.msra.mxu1 %v1208_v19  ;;  %v1058_v25 = vld [vmem:[%s1583_s2 + $0x38] sm:$0xff]  ;;  %v1063_v26 = vld [vmem:[%s1583_s2 + $0x50] sm:$0xff]  ;;  %640 = vst.msk [vmem:[%s1589_s8] sm:$0x1] %vm361_vm4, %v1306_v29  ;;  %1144 = vmatprep.mubr.msk.f32.mxu1 %vm1307_vm5, %v1306_v29 }
  0x1a   :  { %v86_v11 = vsel %vm1380_vm2, %v46_v9, 0.0  ;;  %1210 = vmatprep.subr.bf16.mxu1 %v1305_v22  ;;  %v1211_v27 = vpack.c.bf16 %v1058_v25, %v1057_v24  ;;  %v1064_v28 = vld [vmem:[%s1583_s2 + $0x58] sm:$0xff]  ;;  %v1052_v31 = vld [vmem:[%s1585_s4] ss:$0 sm:$0xff]  ;;  %vm363_vm7 = vcmask 261120   ;;  %v389_v41 = vld [vmem:[%s1583_s2 + $0x8] sm:$0xff] }
  0x1b   :  { %1128 = vmatprep.mubr.msk.f32.mxu0 %vm91_vm1, %v86_v11  ;;  %vm85_vm3 = vcmp.ne.s32.totalorder %v71_v10, 0  ;;  %v1223_v30 = vpack.c.bf16 %v1064_v28, %v1063_v26  ;;  %v388_v40 = vld [vmem:[%s1583_s2] sm:$0xff]  ;;  %v390_v43 = vld [vmem:[%s1583_s2 + $0x10] sm:$0xff]  ;;  %v391_v44 = vld [vmem:[%s1583_s2 + $0x18] sm:$0xff]  ;;  %v378_v47 = vand.u32 3, %v1376_v1  ;;  %vm916_vm13 = vcmask 257024  }
  0x1c   :  { %v87_v14 = vsel %vm85_vm3, %v1036_v13, 0.0  ;;  %v1214_v42 = vpack.c.bf16 %v389_v41, %v388_v40  ;;  %v1217_v48 = vpack.c.bf16 %v391_v44, %v390_v43  ;;  %v669_v51 = vld [vmem:[#allocation2 + $0x20] sm:$0xff]  ;;  %v670_v52 = vld [vmem:[#allocation2 + $0x28] sm:$0xff]  ;;  %v671_v57 = vld [vmem:[#allocation2 + $0x30] sm:$0xff]  ;;  %vm997_vm14 = vcmask 254976   ;;  %s1308_s2 = smov [#allocation5]  }
  0x1d   :  { %1212 = vmatpush3.bf16.msra.mxu1 %v1211_v27  ;;  %vm386_vm9 = vcmp.ne.s32.totalorder %v378_v47, 0  ;;  %v1226_v53 = vpack.c.bf16 %v670_v52, %v669_v51  ;;  %v664_v54 = vld [vmem:[#allocation2] sm:$0xff]  ;;  %v665_v55 = vld [vmem:[#allocation2 + $0x8] sm:$0xff]  ;;  %v672_v58 = vld [vmem:[#allocation2 + $0x38] sm:$0xff]  ;;  %s1019_s16 = sshll.u32 %s1308_s2, 4  ;;  %s1020_s16 = int_to_ptr.vmem [resolvable:$true] %s1019_s16 }
  0x1e   :  { %1129 = vmatmul.mubr.msk.f32.vlgmr.msra.gmra.mrb[0].mxu0 %vm91_vm1, %v87_v14  ;;  %1213 = vmatprep.subr.bf16.mxu1 %v1305_v22  ;;  %v1232_v56 = vpack.c.bf16 %v665_v55, %v664_v54  ;;  %v666_v59 = vld [vmem:[#allocation2 + $0x10] sm:$0xff]  ;;  %v1229_v60 = vpack.c.bf16 %v672_v58, %v671_v57  ;;  %v667_v61 = vld [vmem:[#allocation2 + $0x18] sm:$0xff]  ;;  %v1066_v7 = vld [vmem:[%s1585_s4 + $0x1] ss:$0 sm:$0xff]  ;;  %p1281_p9 = scmp.lt.s32.totalorder %s1020_s16, %s1020_s16 }
  0x1f   :  { %1132 = vmatpush3.msk.msra.mxu0 %vm98_vm0, %v1048_v12  ;;  %1133 = vmatprep.mubr.msk.f32.mxu0 %vm91_vm1, %v1039_v15  ;;  %v1235_v62 = vpack.c.bf16 %v667_v61, %v666_v59  ;;  %v1067_v10 = vld [vmem:[%s1585_s4 + $0x2] ss:$0 sm:$0xff]  ;;  %v1068_v12 = vld [vmem:[%s1585_s4 + $0x3] ss:$0 sm:$0xff]  ;;  %v821_v18 = vld [vmem:[#allocation2 + $0x48] sm:$0xff] }
  0x20   :  { %1219 = vmatprep.subr.bf16.mxu0 %v1305_v22  ;;  %v820_v17 = vld [vmem:[#allocation2 + $0x40] sm:$0xff]  ;;  %v822_v20 = vld [vmem:[#allocation2 + $0x50] sm:$0xff]  ;;  %v823_v21 = vld [vmem:[#allocation2 + $0x58] sm:$0xff] }
  0x21   :  { %v1238_v19 = vpack.c.bf16 %v821_v18, %v820_v17  ;;  %v918_v41 = vld [vmem:[%s1586_s5] sm:$0xf]  ;;  %s1276_s5 = scalar_lea.vmem %s1020_s16, 64 }
  0x22   :  { %v920_v44 = vld [vmem:[%s1587_s6] sm:$0x3]  ;;  %p1277_p8 = scmp.ne.s32.totalorder %s1020_s16, %s1276_s5  ;;  %p1282_p10 = scmp.lt.s32.totalorder %s1276_s5, %s1276_s5 }
  0x24   :  { %p1283_p11 = por %p1282_p10, %p1281_p9 }
  0x26   :  { %1134 = vmatmul.mubr.msk.f32.vlgmr.msra.gmra.mrb[0].mxu0 %vm91_vm1, %v1040_v16  ;;  %v654_v16 = vand.u32 1, %v1376_v1  ;;  %v1241_v1 = vpack.c.bf16 %v823_v21, %v822_v20  ;;  %p1284_p12 = pnand %p1283_p11, %p1277_p8 }
  0x27   :  { %1221 = vmatpush3.bf16.msra.mxu0 %v1220_v23  ;;  %1166 = vmatprep.mubr.msk.f32.mxu0 %vm1307_vm5, %v1306_v29 }
  0x28   :  { %1222 = vmatprep.subr.bf16.mxu0 %v1305_v22  ;;  %vm662_vm11 = vcmp.ne.s32.totalorder %v654_v16, 0 }
  0x2b   :  { %1224 = vmatpush3.bf16.msra.mxu0 %v1223_v30 }
  0x2c   :  { %1231 = vmatprep.subr.bf16.mxu0 %v1305_v22 }
  0xf9   :  { %v1135_v32 = vpop.f32.mrb[0].mxu0 }
  0xfa   :  { %v354_v33 = vadd.f32 %v1135_v32, %v1052_v31  ;;  %v338_v34 = vpop.f32.mrb[1].mxu0 }
  0xfb   :  { %v353_v35 = vadd.f32 %v1052_v31, %v338_v34 }
  0xfc   :  { %vm356_vm6 = vcmp.ge.f32.partialorder %v354_v33, 0.0  ;;  %v358_v36 = vmul.f32 0.2, %v354_v33 }
  0xfd   :  { %vm355_vm8 = vcmp.ge.f32.partialorder %v353_v35, 0.0  ;;  %v357_v37 = vmul.f32 0.2, %v353_v35 }
  0xfe   :  { %v360_v38 = vsel %vm356_vm6, %v354_v33, %v358_v36  ;;  %v1075_v36 = vld [vmem:[%s1585_s4 + $0x5] ss:$0 sm:$0xff] }
  0xff   :  { %365 = vst.msk [vmem:[%s1588_s7 + $0x9] sm:$0xff] %vm363_vm7, %v360_v38  ;;  %v359_v39 = vsel %vm355_vm8, %v353_v35, %v357_v37  ;;  %v1076_v38 = vld [vmem:[%s1585_s4 + $0x6] ss:$0 sm:$0xff] }
 0x100   :  { %364 = vst.msk [vmem:[%s1588_s7 + $0x1] sm:$0xff] %vm363_vm7, %v359_v39 }
 0x107   :  { %v1053_v45 = vld [vmem:[%s1588_s7 + $0x1] ss:$2 sm:$0xff]  ;;  %v1054_v46 = vld [vmem:[%s1588_s7 + $0x2] ss:$2 sm:$0xff] }
 0x108   :  { %1145 = vmatmul.mubr.msk.f32.vlgmr.msra.gmra.mrb[0].mxu1 %vm363_vm7, %v1053_v45  ;;  %1167 = vmatmul.mubr.msk.f32.vlgmr.msra.gmra.mrb[2].mxu0 %vm363_vm7, %v1054_v46  ;;  %v369_v49 = vld [vmem:[%s1588_s7] ss:$2 sm:$0xff] }
 0x109   :  { %1215 = vmatpush3.bf16.msra.mxu1 %v1214_v42  ;;  %1155 = vmatprep.mubr.msk.f32.mxu1 %vm1307_vm5, %v1306_v29  ;;  %v387_v50 = vsel %vm386_vm9, %v369_v49, 0.0 }
 0x10a   :  { %1216 = vmatprep.subr.bf16.mxu1 %v1305_v22  ;;  %1188 = vmatprep.mubr.msk.f32.mxu0 %vm1307_vm5, %v1306_v29 }
 0x10b   :  { %1233 = vmatpush3.bf16.msra.mxu0 %v1232_v56 }
 0x10c   :  { %1234 = vmatprep.subr.bf16.mxu0 %v1305_v22 }
 0x10d   :  { %1218 = vmatpush3.bf16.msra.mxu1 %v1217_v48 }
 0x10e   :  { %1225 = vmatprep.subr.bf16.mxu1 %v1305_v22 }
 0x10f   :  { %1236 = vmatpush3.bf16.msra.mxu0 %v1235_v62 }
 0x110   :  { %1156 = vmatmul.mubr.msk.f32.vlgmr.msra.gmra.mrb[2].mxu1 %vm363_vm7, %v387_v50  ;;  %1202 = vmatprep.subr.mxu0 %v1306_v29 }
 0x111   :  { %1177 = vmatprep.mubr.msk.f32.mxu1 %vm1307_vm5, %v1306_v29  ;;  %1227 = vmatpush3.bf16.msra.mxu1 %v1226_v53 }
 0x112   :  { %1228 = vmatprep.subr.bf16.mxu1 %v1305_v22 }
 0x115   :  { %1230 = vmatpush3.bf16.msra.mxu1 %v1229_v60 }
 0x116   :  { %1237 = vmatprep.subr.bf16.mxu1 %v1305_v22 }
 0x1db   :  { %v466_v63 = vpop.f32.mrb[0].mxu1  ;;  %v617_v0 = vpop.f32.mrb[2].mxu0 }
 0x1dc   :  { %v1146_v2 = vpop.f32.mrb[1].mxu1  ;;  %v1168_v3 = vpop.f32.mrb[3].mxu0 }
 0x1e3   :  { %v539_v4 = vpop.f32.mrb[2].mxu1 }
 0x1e4   :  { %v540_v5 = vadd.f32 %v539_v4, %v466_v63  ;;  %v1157_v6 = vpop.f32.mrb[3].mxu1 }
 0x1e6   :  { %v621_v8 = vadd.f32 %v617_v0, %v540_v5 }
 0x1e8   :  { %v626_v9 = vadd.f32 %v1066_v7, %v621_v8 }
 0x1ea   :  { %vm627_vm10 = vcmp.ge.f32.partialorder %v626_v9, 0.0  ;;  %v628_v11 = vmul.f32 0.2, %v626_v9 }
 0x1ec   :  { %v629_v13 = vsel %vm627_vm10, %v626_v9, %v628_v11 }
 0x1ed   :  { %v634_v14 = vmul.f32 %v1067_v10, %v629_v13 }
 0x1ef   :  { %v639_v15 = vadd.f32 %v1068_v12, %v634_v14 }
 0x1f1   :  { %641 = vst.msk [vmem:[%s1589_s8 + $0x1] sm:$0xff] %vm363_vm7, %v639_v15 }
 0x1f8   :  { %v1069_v23 = vld [vmem:[%s1589_s8 + $0x1] ss:$2 sm:$0xf]  ;;  %v645_v24 = vld [vmem:[%s1589_s8] ss:$2 sm:$0xf] }
 0x1f9   :  { %1178 = vmatmul.mubr.msk.f32.vlgmr.msra.gmra.mrb[4].mxu1 %vm363_vm7, %v1069_v23  ;;  %v663_v25 = vsel %vm662_vm11, %v645_v24, 0.0  ;;  %v1070_v26 = vld [vmem:[%s1589_s8 + $0x2] ss:$2 sm:$0xf] }
 0x1fa   :  { %1239 = vmatpush3.bf16.msra.mxu1 %v1238_v19  ;;  %1189 = vmatmul.mubr.msk.f32.vlgmr.msra.gmra.mrb[4].mxu0 %vm363_vm7, %v663_v25 }
 0x1fb   :  { %1240 = vmatprep.subr.bf16.mxu1 %v1305_v22  ;;  %1199 = vmatprep.mubr.msk.f32.mxu1 %vm1307_vm5, %v1306_v29  ;;  %v1074_v22 = vld [vmem:[%s1585_s4 + $0x4] ss:$0 sm:$0xff] }
 0x1fc   :  { %1204 = vmatprep.mubr.msk.f32.mxu0 %vm1307_vm5, %v1306_v29 }
 0x1fe   :  { %1242 = vmatpush3.bf16.msra.mxu1 %v1241_v1 }
 0x201   :  { %1200 = vmatmul.mubr.msk.f32.vlgmr.msra.gmra.mrb[6].mxu1 %vm363_vm7, %v1070_v26 }
 0x2cc   :  { %v742_v27 = vpop.f32.mrb[4].mxu1 }
 0x2cd   :  { %v1179_v28 = vpop.f32.mrb[5].mxu1  ;;  %v815_v30 = vpop.f32.mrb[4].mxu0 }
 0x2ce   :  { %v816_v31 = vadd.f32 %v815_v30, %v742_v27  ;;  %v1190_v32 = vpop.f32.mrb[5].mxu0 }
 0x2d4   :  { %v893_v33 = vpop.f32.mrb[6].mxu1 }
 0x2d5   :  { %v897_v34 = vadd.f32 %v893_v33, %v816_v31  ;;  %v1201_v35 = vpop.f32.mrb[7].mxu1 }
 0x2d7   :  { %v902_v29 = vadd.f32 %v1074_v22, %v897_v34 }
 0x2d9   :  { %vm903_vm12 = vcmp.ge.f32.partialorder %v902_v29, 0.0  ;;  %v904_v37 = vmul.f32 0.2, %v902_v29 }
 0x2db   :  { %v905_v39 = vsel %vm903_vm12, %v902_v29, %v904_v37 }
 0x2dc   :  { %v910_v40 = vmul.f32 %v1075_v36, %v905_v39 }
 0x2de   :  { %v915_v42 = vadd.f32 %v1076_v38, %v910_v40 }
 0x2e0   :  { %v919_v43 = vmul.f32 %v918_v41, %v915_v42  ;;  %917 = vst.msk [vmem:[#allocation5] sm:$0xf] %vm916_vm13, %v915_v42 }
 0x2e2   :  { %1203 = vmatpush3.msk.msra.mxu0 %vm98_vm0, %v919_v43 }
 0x2e3   :  { %1205 = vmatmul.mubr.msk.f32.vlgmr.msra.gmra.mrb[6].mxu0 %vm91_vm1, %v920_v44 }
 0x3b6   :  { %v993_v45 = vpop.f32.mrb[6].mxu0 }
 0x3b7   :  { %v1206_v46 = vpop.f32.mrb[7].mxu0  ;;  %v998_v47 = vsel %vm997_vm14, %v993_v45, 0.0 }
 0x3b8   :  { %999 = vadd.xlane.f32.xlu0 %v998_v47 }
 0x3b9   :  { %1287 = shalt.err (!%p1284_p12)
}
 0x3ba   :  { %s1288_s17 = scalar_lea.hbm %s1590_s9, 64 }
 0x3bb   :  { %p1289_p13 = scmp.ne.s32.totalorder %s1590_s9, %s1288_s17  ;;  %p1292_p0 = scmp.lt.u32.totalorder %s1288_s17, %s1590_s9 }
 0x3bd   :  { %p1294_p1 = pnand %p1292_p0, %p1289_p13 }
 0x3bf   :  { %1297 = shalt.err (!%p1294_p1)
}
 0x3c0   :  { %1022 = dma.vmem_to_hbm [thread:$0]  %s1020_s16, 64, %s1590_s9, [#allocation4]   ;;  %v1079_v48 = vld [vmem:[%s1585_s4 + $0x7] ss:$0 sm:$0xff]  ;;  %vm1007_vm15 = vcmask 1024  }
 0x445   :  { %v1000_v49 = vpop.xlane.xlu0 %999 }
 0x446   :  { %v1006_v50 = vadd.f32 %v1079_v48, %v1000_v49 }
 0x448   :  { %1008 = vst.msk [vmem:[%s1591_s10] sm:$0x3] %vm1007_vm15, %v1006_v50 }
 0x449   :  { %1300 = dma.done.wait [#allocation4], 64  }
 0x44a   :  { %1301 = vsyncadd [#allocation4], 4294967232 }
 0x44b   :  { %1034 = vsyncpa [#allocation3], 1 }
 0x44c   :  { %1035 = vsyncpa [#allocation4], 1 }

</bundles_post_ra>
